<compile_context>
chip_gen: v7x
topology: tpu7x:2x2x1
jax: 0.10.0
libtpu: 0.0.40
codegen_flags: <defaults>
</compile_context>

<pallas_src>
import functools

import jax
import jax.numpy as jnp
import numpy as np
from jax import lax
from jax.experimental import pallas as pl
from jax.experimental.pallas import tpu as pltpu

_EPS = 1e-5


# ------------------------------ in-kernel helpers ----------------------------

def _edge_masks(l):
    # Lane masks implementing the k=3 conv's zero padding inside a sequence.
    lane = lax.broadcasted_iota(jnp.int32, (1, l), 1)
    not_first = (lane != 0).astype(jnp.float32)       # kills the x[i-1] tap at i=0
    not_last = (lane != l - 1).astype(jnp.float32)    # kills the x[i+1] tap at i=L-1
    return not_first, not_last


def _conv3(xs, w_bf16, not_first, not_last):
    """Conv1d(k=3, s=1, p=1) on one sequence as ONE bf16 MXU matmul.

    xs: (C, L) f32.  w_bf16: (O, 3*C) bf16 laid out [tap0 | tap1 | tap2]
    where tap0 multiplies x[i-1].  Returns (O, L) f32.
    """
    l = xs.shape[1]
    left = pltpu.roll(xs, shift=1, axis=1) * not_first       # x[:, i-1]
    right = pltpu.roll(xs, shift=l - 1, axis=1) * not_last    # x[:, i+1]
    patches = jnp.concatenate([left, xs, right], axis=0).astype(jnp.bfloat16)
    return jnp.dot(w_bf16, patches, preferred_element_type=jnp.float32)


# ---------------------------------- kernels -----------------------------------

def stats_kernel(x_ref, ws_ref, stats_ref, *, tn, l):
    """Pass A: accumulate per-channel sum / sumsq of conv1+residual outputs."""
    not_first, not_last = _edge_masks(l)
    ws = ws_ref[...]                                   # (2*Cout, 3*Cin_p) bf16
    s_acc = None
    q_acc = None
    for i in range(tn):                                # tn is small and static
        z = _conv3(x_ref[i].astype(jnp.float32), ws, not_first, not_last)
        s_i = jnp.sum(z, axis=1, keepdims=True)        # (2*Cout, 1)
        q_i = jnp.sum(z * z, axis=1, keepdims=True)
        s_acc = s_i if s_acc is None else s_acc + s_i
        q_acc = q_i if q_acc is None else q_acc + q_i
    partial = jnp.concatenate([s_acc, q_acc], axis=1)  # (2*Cout, 2)

    @pl.when(pl.program_id(0) == 0)
    def _():
        stats_ref[...] = jnp.zeros_like(stats_ref)

    stats_ref[...] += partial


def main_kernel(x_ref, ws_ref, w2_ref, pp_ref, out_ref, *, tn, cout, l):
    """Pass B: conv1+residual -> fused BN (scale/shift) -> ReLU -> conv2 -> add."""
    not_first, not_last = _edge_masks(l)
    ws = ws_ref[...]                                   # (2*Cout, 3*Cin_p) bf16
    w2 = w2_ref[...]                                   # (Cout, 3*Cout)    bf16
    scale = pp_ref[:, 0:1]                             # gamma * rsqrt(var+eps)
    shift = pp_ref[:, 1:2]                             # beta - mean*scale
    cb2 = pp_ref[0:cout, 2:3]                          # conv2 bias
    for i in range(tn):
        z = _conv3(x_ref[i].astype(jnp.float32), ws, not_first, not_last)
        zn = z * scale + shift                         # both BNs in one pass
        y = jnp.maximum(zn[0:cout, :], 0.0)            # main branch -> ReLU
        res = zn[cout:2 * cout, :]                     # residual branch
        y = _conv3(y, w2, not_first, not_last) + cb2   # conv2
        out_ref[i] = (y + res).astype(out_ref.dtype)


# ---------------------------------- wrapper -----------------------------------

def _round_up(v, m):
    return (v + m - 1) // m * m


def _pick_tile(n, l, target_lanes=512):
    """Whole-sequence batch tile: >= target lanes when L is small, divides N."""
    tn = max(1, min(n, target_lanes // max(l, 1)))
    while n % tn:
        tn -= 1
    return tn


def first_conv(x, params):
    N, Cin, L = x.shape
    Cout = params['w1'].shape[0]
    Cin_p = _round_up(Cin, 8)                # sublane-align the im2col concat
    tn = _pick_tile(N, L)
    grid = (N // tn,)

    # Layout glue (weights only — activations stay in native NCL layout).
    x_p = jnp.pad(x.astype(jnp.float32), ((0, 0), (0, Cin_p - Cin), (0, 0)))

    # Stacked conv1 + residual-1x1 weight, rows [0:Cout]=conv1, [Cout:2Cout]=res;
    # flattened per row as [tap0 | tap1 | tap2]; residual only uses the center.
    w1p = jnp.pad(params['w1'], ((0, 0), (0, Cin_p - Cin), (0, 0)))
    wrp = jnp.pad(params['wr'][:, :, 0], ((0, 0), (0, Cin_p - Cin)))
    w1f = jnp.transpose(w1p, (0, 2, 1)).reshape(Cout, 3 * Cin_p)
    zed = jnp.zeros((Cout, Cin_p), jnp.float32)
    wrf = jnp.concatenate([zed, wrp, zed], axis=1)
    ws = jnp.concatenate([w1f, wrf], axis=0).astype(jnp.bfloat16)
    w2f = jnp.transpose(params['w2'], (0, 2, 1)).reshape(
        Cout, 3 * Cout).astype(jnp.bfloat16)

    x_spec = pl.BlockSpec((tn, Cin_p, L), lambda t: (t, 0, 0))
    ws_spec = pl.BlockSpec(ws.shape, lambda t: (0, 0))

    # Pass A: global BN statistics (grid-resident accumulator output).
    stats = pl.pallas_call(
        functools.partial(stats_kernel, tn=tn, l=L),
        out_shape=jax.ShapeDtypeStruct((2 * Cout, 2), jnp.float32),
        grid=grid,
        in_specs=[x_spec, ws_spec],
        out_specs=pl.BlockSpec((2 * Cout, 2), lambda t: (0, 0)),
        compiler_params=pltpu.CompilerParams(
            dimension_semantics=("arbitrary",)),
    )(x_p, ws)

    # Fold BN into per-channel scale/shift (tiny (2*Cout,) vector math).
    cnt = float(N * L)
    mean = stats[:, 0] / cnt
    var = stats[:, 1] / cnt - mean * mean
    gamma = jnp.concatenate([params['g1'], params['gr']])
    beta = jnp.concatenate([params['b1'], params['br']])
    scale = gamma * lax.rsqrt(var + _EPS)
    shift = beta - mean * scale
    cb2e = jnp.concatenate([params['cb2'], jnp.zeros((Cout,), jnp.float32)])
    pp = jnp.stack([scale, shift, cb2e, jnp.zeros_like(scale)], axis=1)

    # Pass B: normalize + ReLU + conv2 + residual add, fully parallel tiles.
    out = pl.pallas_call(
        functools.partial(main_kernel, tn=tn, cout=Cout, l=L),
        out_shape=jax.ShapeDtypeStruct((N, Cout, L), jnp.float32),
        grid=grid,
        in_specs=[x_spec, ws_spec,
                  pl.BlockSpec(w2f.shape, lambda t: (0, 0)),
                  pl.BlockSpec(pp.shape, lambda t: (0, 0))],
        out_specs=pl.BlockSpec((tn, Cout, L), lambda t: (t, 0, 0)),
        compiler_params=pltpu.CompilerParams(
            dimension_semantics=("parallel",)),
    )(x_p, ws, w2f, pp)
    return out


# ----------------------------- pure-JAX reference -----------------------------

def first_conv_ref(x, p):
    def conv(t, w, b, pad):
        y = lax.conv_general_dilated(t, w, (1,), [(pad, pad)],
                                     dimension_numbers=('NCH', 'OIH', 'NCH'))
        return y + b.reshape(1, -1, 1)

    def bn(t, g, b):
        m = t.mean(axis=(0, 2), keepdims=True)
        v = ((t - m) ** 2).mean(axis=(0, 2), keepdims=True)
        return (t - m) / jnp.sqrt(v + _EPS) * g.reshape(1, -1, 1) + b.reshape(1, -1, 1)

    y = conv(x, p['w1'], p['cb1'], 1)
    y = jnp.maximum(bn(y, p['g1'], p['b1']), 0.0)
    y = conv(y, p['w2'], p['cb2'], 1)
    s = conv(x, p['wr'], p['rb'], 0)
    s = bn(s, p['gr'], p['br'])
    return y + s


# ------------------------------------ main -------------------------------------

if __name__ == "__main__":
    # N=8 sequences, L=128 -> tile = 4 whole sequences (512 lanes), grid of 2.
    N, Cin, Cout, L = 8, 4, 8, 128

    key = jax.random.PRNGKey(0)
    keys = jax.random.split(key, 12)

    x = jax.random.normal(keys[0], (N, Cin, L), jnp.float32)

    params = {
        # Conv1d(Cin, Cout, k=3, s=1, p=1)
        'w1': 0.3 * jax.random.normal(keys[1], (Cout, Cin, 3), jnp.float32),
        'cb1': 0.1 * jax.random.normal(keys[2], (Cout,), jnp.float32),
        # BatchNorm1d(Cout)
        'g1': 1.0 + 0.1 * jax.random.normal(keys[3], (Cout,), jnp.float32),
        'b1': 0.1 * jax.random.normal(keys[4], (Cout,), jnp.float32),
        # Conv1d(Cout, Cout, k=3, s=1, p=1)
        'w2': 0.3 * jax.random.normal(keys[5], (Cout, Cout, 3), jnp.float32),
        'cb2': 0.1 * jax.random.normal(keys[6], (Cout,), jnp.float32),
        # Residual Conv1d(Cin, Cout, k=1, s=1, p=0)
        'wr': 0.3 * jax.random.normal(keys[7], (Cout, Cin, 1), jnp.float32),
        'rb': 0.1 * jax.random.normal(keys[8], (Cout,), jnp.float32),
        # Residual BatchNorm1d(Cout)
        'gr': 1.0 + 0.1 * jax.random.normal(keys[9], (Cout,), jnp.float32),
        'br': 0.1 * jax.random.normal(keys[10], (Cout,), jnp.float32),
    }

    out = jax.block_until_ready(first_conv(x, params))
    ref = jax.block_until_ready(first_conv_ref(x, params))

    assert out.shape == (N, Cout, L), out.shape
    # bf16 MXU operands -> bf16-level tolerance vs. the f32 reference.
    max_err = float(np.max(np.abs(np.asarray(out) - np.asarray(ref))))
    assert np.allclose(np.asarray(out), np.asarray(ref),
                       atol=5e-2, rtol=5e-2), max_err

    print("KERNEL_OK")
</pallas_src>

<mosaic_0001>
module attributes {stable_mosaic.version = 11 : i64} {
  func.func @stats_kernel(%arg0: i32, %arg1: memref<4x8x128xf32, #tpu.memory_space<vmem>>, %arg2: memref<16x24xbf16, #tpu.memory_space<vmem>>, %arg3: memref<16x2xf32, #tpu.memory_space<vmem>>) attributes {dimension_semantics = [#tpu.dimension_semantics<arbitrary>], iteration_bounds = array<i64: 2>, scalar_prefetch = 0 : i64, scratch_operands = 0 : i64, tpu.core_type = #tpu.core_type<tc>, window_params = [{transform_indices = @transform_0, window_bounds = array<i64: 4, 8, 128>}, {pipeline_mode = #tpu.pipeline_mode<synchronous>, transform_indices = @transform_1, window_bounds = array<i64: 16, 24>}, {pipeline_mode = #tpu.pipeline_mode<synchronous>, transform_indices = @transform_2, window_bounds = array<i64: 16, 2>}]} {
    %0 = tpu.iota {dimensions = array<i32: 1>} : vector<1x128xi32>
    %c0_i32 = arith.constant 0 : i32
    %1 = vector.broadcast %c0_i32 : i32 to vector<1x128xi32>
    %2 = arith.cmpi ne, %0, %1 : vector<1x128xi32>
    %3 = arith.extui %2 : vector<1x128xi1> to vector<1x128xi32>
    %4 = arith.sitofp %3 : vector<1x128xi32> to vector<1x128xf32>
    %c127_i32 = arith.constant 127 : i32
    %5 = vector.broadcast %c127_i32 : i32 to vector<1x128xi32>
    %6 = arith.cmpi ne, %0, %5 : vector<1x128xi32>
    %7 = arith.extui %6 : vector<1x128xi1> to vector<1x128xi32>
    %8 = arith.sitofp %7 : vector<1x128xi32> to vector<1x128xf32>
    %c0 = arith.constant 0 : index
    %c0_0 = arith.constant 0 : index
    %9 = vector.load %arg2[%c0, %c0_0] : memref<16x24xbf16, #tpu.memory_space<vmem>>, vector<16x24xbf16>
    %c0_1 = arith.constant 0 : index
    %c0_2 = arith.constant 0 : index
    %c0_3 = arith.constant 0 : index
    %10 = vector.load %arg1[%c0_1, %c0_2, %c0_3] : memref<4x8x128xf32, #tpu.memory_space<vmem>>, vector<1x8x128xf32>
    %11 = vector.shape_cast %10 : vector<1x8x128xf32> to vector<8x128xf32>
    %c1_i32 = arith.constant 1 : i32
    %12 = tpu.dynamic_rotate %11 by %c1_i32 dim 1 : vector<8x128xf32>, i32 -> vector<8x128xf32>
    %13 = vector.broadcast %4 : vector<1x128xf32> to vector<8x128xf32>
    %14 = arith.mulf %12, %13 : vector<8x128xf32>
    %c127_i32_4 = arith.constant 127 : i32
    %15 = tpu.dynamic_rotate %11 by %c127_i32_4 dim 1 : vector<8x128xf32>, i32 -> vector<8x128xf32>
    %16 = vector.broadcast %8 : vector<1x128xf32> to vector<8x128xf32>
    %17 = arith.mulf %15, %16 : vector<8x128xf32>
    %18 = tpu.concatenate %14, %11, %17 in 0 : vector<8x128xf32>, vector<8x128xf32>, vector<8x128xf32> -> vector<24x128xf32>
    %19 = arith.truncf %18 : vector<24x128xf32> to vector<24x128xbf16>
    %cst = arith.constant dense<0.000000e+00> : vector<16x128xf32>
    %20 = tpu.matmul %9, %19, %cst {dimension_numbers = #tpu.dot_dimension_numbers<[1], [0], [0], [1], [0, 0, 1, 1], [], []>} : vector<16x24xbf16>, vector<24x128xbf16>, vector<16x128xf32> -> vector<16x128xf32>
    %cst_5 = arith.constant dense<0.000000e+00> : vector<16xf32>
    %21 = vector.multi_reduction <add>, %20, %cst_5 [1] : vector<16x128xf32> to vector<16xf32>
    %22 = vector.shape_cast %21 : vector<16xf32> to vector<16x1xf32>
    %23 = arith.mulf %20, %20 : vector<16x128xf32>
    %cst_6 = arith.constant dense<0.000000e+00> : vector<16xf32>
    %24 = vector.multi_reduction <add>, %23, %cst_6 [1] : vector<16x128xf32> to vector<16xf32>
    %25 = vector.shape_cast %24 : vector<16xf32> to vector<16x1xf32>
    %c1 = arith.constant 1 : index
    %c0_7 = arith.constant 0 : index
    %c0_8 = arith.constant 0 : index
    %26 = vector.load %arg1[%c1, %c0_7, %c0_8] : memref<4x8x128xf32, #tpu.memory_space<vmem>>, vector<1x8x128xf32>
    %27 = vector.shape_cast %26 : vector<1x8x128xf32> to vector<8x128xf32>
    %c1_i32_9 = arith.constant 1 : i32
    %28 = tpu.dynamic_rotate %27 by %c1_i32_9 dim 1 : vector<8x128xf32>, i32 -> vector<8x128xf32>
    %29 = vector.broadcast %4 : vector<1x128xf32> to vector<8x128xf32>
    %30 = arith.mulf %28, %29 : vector<8x128xf32>
    %c127_i32_10 = arith.constant 127 : i32
    %31 = tpu.dynamic_rotate %27 by %c127_i32_10 dim 1 : vector<8x128xf32>, i32 -> vector<8x128xf32>
    %32 = vector.broadcast %8 : vector<1x128xf32> to vector<8x128xf32>
    %33 = arith.mulf %31, %32 : vector<8x128xf32>
    %34 = tpu.concatenate %30, %27, %33 in 0 : vector<8x128xf32>, vector<8x128xf32>, vector<8x128xf32> -> vector<24x128xf32>
    %35 = arith.truncf %34 : vector<24x128xf32> to vector<24x128xbf16>
    %cst_11 = arith.constant dense<0.000000e+00> : vector<16x128xf32>
    %36 = tpu.matmul %9, %35, %cst_11 {dimension_numbers = #tpu.dot_dimension_numbers<[1], [0], [0], [1], [0, 0, 1, 1], [], []>} : vector<16x24xbf16>, vector<24x128xbf16>, vector<16x128xf32> -> vector<16x128xf32>
    %cst_12 = arith.constant dense<0.000000e+00> : vector<16xf32>
    %37 = vector.multi_reduction <add>, %36, %cst_12 [1] : vector<16x128xf32> to vector<16xf32>
    %38 = vector.shape_cast %37 : vector<16xf32> to vector<16x1xf32>
    %39 = arith.mulf %36, %36 : vector<16x128xf32>
    %cst_13 = arith.constant dense<0.000000e+00> : vector<16xf32>
    %40 = vector.multi_reduction <add>, %39, %cst_13 [1] : vector<16x128xf32> to vector<16xf32>
    %41 = vector.shape_cast %40 : vector<16xf32> to vector<16x1xf32>
    %42 = arith.addf %22, %38 : vector<16x1xf32>
    %43 = arith.addf %25, %41 : vector<16x1xf32>
    %c2 = arith.constant 2 : index
    %c0_14 = arith.constant 0 : index
    %c0_15 = arith.constant 0 : index
    %44 = vector.load %arg1[%c2, %c0_14, %c0_15] : memref<4x8x128xf32, #tpu.memory_space<vmem>>, vector<1x8x128xf32>
    %45 = vector.shape_cast %44 : vector<1x8x128xf32> to vector<8x128xf32>
    %c1_i32_16 = arith.constant 1 : i32
    %46 = tpu.dynamic_rotate %45 by %c1_i32_16 dim 1 : vector<8x128xf32>, i32 -> vector<8x128xf32>
    %47 = vector.broadcast %4 : vector<1x128xf32> to vector<8x128xf32>
    %48 = arith.mulf %46, %47 : vector<8x128xf32>
    %c127_i32_17 = arith.constant 127 : i32
    %49 = tpu.dynamic_rotate %45 by %c127_i32_17 dim 1 : vector<8x128xf32>, i32 -> vector<8x128xf32>
    %50 = vector.broadcast %8 : vector<1x128xf32> to vector<8x128xf32>
    %51 = arith.mulf %49, %50 : vector<8x128xf32>
    %52 = tpu.concatenate %48, %45, %51 in 0 : vector<8x128xf32>, vector<8x128xf32>, vector<8x128xf32> -> vector<24x128xf32>
    %53 = arith.truncf %52 : vector<24x128xf32> to vector<24x128xbf16>
    %cst_18 = arith.constant dense<0.000000e+00> : vector<16x128xf32>
    %54 = tpu.matmul %9, %53, %cst_18 {dimension_numbers = #tpu.dot_dimension_numbers<[1], [0], [0], [1], [0, 0, 1, 1], [], []>} : vector<16x24xbf16>, vector<24x128xbf16>, vector<16x128xf32> -> vector<16x128xf32>
    %cst_19 = arith.constant dense<0.000000e+00> : vector<16xf32>
    %55 = vector.multi_reduction <add>, %54, %cst_19 [1] : vector<16x128xf32> to vector<16xf32>
    %56 = vector.shape_cast %55 : vector<16xf32> to vector<16x1xf32>
    %57 = arith.mulf %54, %54 : vector<16x128xf32>
    %cst_20 = arith.constant dense<0.000000e+00> : vector<16xf32>
    %58 = vector.multi_reduction <add>, %57, %cst_20 [1] : vector<16x128xf32> to vector<16xf32>
    %59 = vector.shape_cast %58 : vector<16xf32> to vector<16x1xf32>
    %60 = arith.addf %42, %56 : vector<16x1xf32>
    %61 = arith.addf %43, %59 : vector<16x1xf32>
    %c3 = arith.constant 3 : index
    %c0_21 = arith.constant 0 : index
    %c0_22 = arith.constant 0 : index
    %62 = vector.load %arg1[%c3, %c0_21, %c0_22] : memref<4x8x128xf32, #tpu.memory_space<vmem>>, vector<1x8x128xf32>
    %63 = vector.shape_cast %62 : vector<1x8x128xf32> to vector<8x128xf32>
    %c1_i32_23 = arith.constant 1 : i32
    %64 = tpu.dynamic_rotate %63 by %c1_i32_23 dim 1 : vector<8x128xf32>, i32 -> vector<8x128xf32>
    %65 = vector.broadcast %4 : vector<1x128xf32> to vector<8x128xf32>
    %66 = arith.mulf %64, %65 : vector<8x128xf32>
    %c127_i32_24 = arith.constant 127 : i32
    %67 = tpu.dynamic_rotate %63 by %c127_i32_24 dim 1 : vector<8x128xf32>, i32 -> vector<8x128xf32>
    %68 = vector.broadcast %8 : vector<1x128xf32> to vector<8x128xf32>
    %69 = arith.mulf %67, %68 : vector<8x128xf32>
    %70 = tpu.concatenate %66, %63, %69 in 0 : vector<8x128xf32>, vector<8x128xf32>, vector<8x128xf32> -> vector<24x128xf32>
    %71 = arith.truncf %70 : vector<24x128xf32> to vector<24x128xbf16>
    %cst_25 = arith.constant dense<0.000000e+00> : vector<16x128xf32>
    %72 = tpu.matmul %9, %71, %cst_25 {dimension_numbers = #tpu.dot_dimension_numbers<[1], [0], [0], [1], [0, 0, 1, 1], [], []>} : vector<16x24xbf16>, vector<24x128xbf16>, vector<16x128xf32> -> vector<16x128xf32>
    %cst_26 = arith.constant dense<0.000000e+00> : vector<16xf32>
    %73 = vector.multi_reduction <add>, %72, %cst_26 [1] : vector<16x128xf32> to vector<16xf32>
    %74 = vector.shape_cast %73 : vector<16xf32> to vector<16x1xf32>
    %75 = arith.mulf %72, %72 : vector<16x128xf32>
    %cst_27 = arith.constant dense<0.000000e+00> : vector<16xf32>
    %76 = vector.multi_reduction <add>, %75, %cst_27 [1] : vector<16x128xf32> to vector<16xf32>
    %77 = vector.shape_cast %76 : vector<16xf32> to vector<16x1xf32>
    %78 = arith.addf %60, %74 : vector<16x1xf32>
    %79 = arith.addf %61, %77 : vector<16x1xf32>
    %80 = tpu.concatenate %78, %79 in 1 : vector<16x1xf32>, vector<16x1xf32> -> vector<16x2xf32>
    %c0_i32_28 = arith.constant 0 : i32
    %81 = arith.cmpi eq, %arg0, %c0_i32_28 : i32
    %82 = arith.extui %81 : i1 to i32
    %c0_i32_29 = arith.constant 0 : i32
    %83 = arith.cmpi ne, %82, %c0_i32_29 : i32
    scf.if %83 {
      %cst_34 = arith.constant 0.000000e+00 : f32
      %87 = vector.broadcast %cst_34 : f32 to vector<16x2xf32>
      %c0_35 = arith.constant 0 : index
      %c0_36 = arith.constant 0 : index
      %88 = vector.load %arg3[%c0_35, %c0_36] : memref<16x2xf32, #tpu.memory_space<vmem>>, vector<16x2xf32>
      tpu.vector_store %arg3[%c0_35, %c0_36], %87 {strides = array<i32>} : memref<16x2xf32, #tpu.memory_space<vmem>>, vector<16x2xf32>,
    } else {
    }
    %c0_30 = arith.constant 0 : index
    %c0_31 = arith.constant 0 : index
    %84 = vector.load %arg3[%c0_30, %c0_31] : memref<16x2xf32, #tpu.memory_space<vmem>>, vector<16x2xf32>
    %85 = arith.addf %84, %80 : vector<16x2xf32>
    %c0_32 = arith.constant 0 : index
    %c0_33 = arith.constant 0 : index
    %86 = vector.load %arg3[%c0_32, %c0_33] : memref<16x2xf32, #tpu.memory_space<vmem>>, vector<16x2xf32>
    tpu.vector_store %arg3[%c0_32, %c0_33], %85 {strides = array<i32>} : memref<16x2xf32, #tpu.memory_space<vmem>>, vector<16x2xf32>,
    return
  }
  func.func @transform_0(%arg0: i32) -> (i32, i32, i32) {
    %c0_i32 = arith.constant 0 : i32
    %c0_i32_0 = arith.constant 0 : i32
    %c0_i32_1 = arith.constant 0 : i32
    return %arg0, %c0_i32, %c0_i32_0 : i32, i32, i32
  }
  func.func @transform_1(%arg0: i32) -> (i32, i32) {
    %c0_i32 = arith.constant 0 : i32
    %c0_i32_0 = arith.constant 0 : i32
    %c0_i32_1 = arith.constant 0 : i32
    return %c0_i32, %c0_i32_0 : i32, i32
  }
  func.func @transform_2(%arg0: i32) -> (i32, i32) {
    %c0_i32 = arith.constant 0 : i32
    %c0_i32_0 = arith.constant 0 : i32
    %c0_i32_1 = arith.constant 0 : i32
    return %c0_i32, %c0_i32_0 : i32, i32
  }
}

</mosaic_0001>

<bundles_post_ra>
// kernel: tpu_custom_call.1
= control target key start
LH: loop header
LB: loop body
LE: loop exit
PB: predicated region body
PF: predicated region fallthrough
CT: control target
= control target key end

     0   :  { %7 = vsyncpa [#allocation3], 0  ;;  %s959_s0 = inlined_call_operand.hbm [shape: f32[8,8,128], index: 0, kind: input, shape index: {}]   ;;  %s960_s1 = inlined_call_operand.hbm [shape: bf16[16,24], index: 1, kind: input, shape index: {}]   ;;  %s961_s2 = inlined_call_operand.vmem [shape: f32[16,2], index: 2, kind: output, shape index: {}]  }
   0x1   :  { %9 = vsyncpa [#allocation3 + $0x1], 0 }
   0x2   :  { %10 = vsyncpa [#allocation5], 0  ;;  %s771_s9 = smov 0   ;;  %s773_s10 = smov 0  }
   0x3   :  { %s775_s11 = smov 0   ;;  %s777_s12 = smov 0  }
   0x4 LB: > { %s519_s13 = sadd.s32 4294967295, %s743_s12   ;;  %p36_p0 = scmp.ne.s32.totalorder %s735_s10, %s731_s9  ;;  %s743_s12 = sphi %s777_s12, %s979_s12   ;;  %s739_s11 = sphi %s775_s11, %s978_s11   ;;  %s735_s10 = sphi %s773_s10, %s977_s10   ;;  %s731_s9 = sphi %s771_s9, %s976_s9  }
   0x5   : > { %p791_p1 = scmp.eq.s32.totalorder %s519_s13, 0  ;;  %p520_p2 = scmp.ge.s32.totalorder %s743_s12, 1 }
   0x6   : > { %p89_p3 = scmp.lt.s32.totalorder %s743_s12, 3  ;;  %p797_p4 = scmp.ne.s32.totalorder %s519_s13, 0 }
   0x7   : > { %s966_s14 = scalar_select %p791_p1, 1, 0 }
   0x8   : > { %s967_s15 = scalar_select %p797_p4, 1, 0 }
   0x9   : > { %p803_p5 = por %p791_p1, %p36_p0  ;;  %p807_p6 = pnand %p520_p2, %p89_p3 }
   0xa   : > { %s745_s18 = smov [#allocation4]   ;;  %s820_s21 = sadd.s32 1, %s743_s12  }
   0xb   : > { %s968_s16 = scalar_select %p803_p5, 1, 0 }
   0xc   : > { %s969_s17 = scalar_select %p807_p6, 1, 0 }
   0xd   : > { %s101_s19 = sshll.u32 %s745_s18, 4  ;;  %p593_p7 = pneg %p807_p6  ;;  %s102_s19 = int_to_ptr.vmem [resolvable:$true] %s101_s19 }
   0xe   : > { %s23_s22 = sadd.s32 1, %s739_s11  ;;  %s20_s23 = ssub.s32 %s743_s12, %s820_s21 }
   0xf   : > { %p815_p8 = pnand %p593_p7, %p791_p1  ;;  %s647_s26 = scalar_lea.hbm %s960_s1, 128 }
  0x10   : > { %p648_p9 = scmp.ne.s32.totalorder %s960_s1, %s647_s26  ;;  %p654_p13 = scmp.lt.u32.totalorder %s647_s26, %s960_s1 }
  0x11   : > { %p649_p10 = pneg %p815_p8 }
  0x13   : > { %p650_p11 = pnand %p649_p10, %p648_p9 }
  0x15   : > { %p651_p12 = pneg %p650_p11 }
  0x17   : > { %p656_p0 = pnand %p654_p13, %p651_p12 }
  0x19   : > { %659 = shalt.err (!%p656_p0)
}
  0x1a   : > { %s660_s3 = scalar_lea.vmem %s102_s19, 128  ;;  %p668_p4 = scmp.lt.s32.totalorder %s102_s19, %s102_s19 }
  0x1b   : > { %p661_p2 = scmp.ne.s32.totalorder %s102_s19, %s660_s3  ;;  %p669_p1 = scmp.lt.s32.totalorder %s660_s3, %s660_s3 }
  0x1d   : > { %p663_p3 = pnand %p661_p2, %p649_p10  ;;  %p670_p5 = por %p669_p1, %p668_p4 }
  0x1f   : > { %p664_p7 = pneg %p663_p3 }
  0x21   : > { %p671_p6 = pnand %p670_p5, %p664_p7 }
  0x23   : > { %674 = shalt.err (!%p671_p6)
}
  0x24   : > { %s746_s4 = smov 64   ;;  %s747_s5 = smov 4  }
  0x25   : > { %596 = dma.hbm_to_vmem [thread:$0]  (!%p815_p8), %s960_s1, 128, %s102_s19, [#allocation5], %s746_s4, %s746_s4, %s747_s5  }
  0x26   : > { %p21_p9 = scmp.eq.s32.totalorder %s20_s23, 0  ;;  %p30_p10 = scmp.ne.s32.totalorder %s739_s11, %s735_s10 }
  0x27   : > { %p31_p1 = scmp.eq.s32.totalorder %s743_s12, 0  ;;  %p602_p4 = scmp.lt.s32.totalorder %s743_s12, 2 }
  0x28   : > { %s846_s8 = scalar_select %p21_p9, %s739_s11, %s23_s22  }
  0x29   : > { %p32_p5 = por %p31_p1, %p30_p10  ;;  %s115_s9 = sand.u32 1, %s739_s11  }
  0x2a   : > { %s523_s13 = sshll.u32 %s115_s9, 5  ;;  %s542_s18 = sshll.u32 %s743_s12, 9 }
  0x2b   : > { %s853_s26 = scalar_lea.hbm %s959_s0, %s542_s18  ;;  %s119_s19 = scalar_lea.vmem [#allocation2], %s523_s13 }
  0x2c   : > { %s126_s20 = sshll.u32 %s119_s19, 4  ;;  %p857_p6 = pnand %p602_p4, %p32_p5  ;;  %s855_s20 = int_to_ptr.vmem [resolvable:$true] %s126_s20 }
  0x2d   : > { %s861_s12 = scalar_lea.sflag [#allocation3], %s115_s9  ;;  %s675_s23 = scalar_lea.hbm %s853_s26, 512 }
  0x2e   : > { %p676_p8 = scmp.ne.s32.totalorder %s853_s26, %s675_s23  ;;  %p677_p11 = pneg %p857_p6 }
  0x2f   : > { %s680_s29 = scalar_lea.hbm %s959_s0, 1024  ;;  %p681_p0 = scmp.lt.u32.totalorder %s853_s26, %s959_s0 }
  0x30   : > { %p678_p12 = pnand %p677_p11, %p676_p8  ;;  %p682_p2 = scmp.lt.u32.totalorder %s680_s29, %s675_s23 }
  0x31   : > { %p684_p7 = scmp.lt.u32.totalorder %s675_s23, %s853_s26 }
  0x32   : > { %p679_p13 = pneg %p678_p12  ;;  %p683_p3 = por %p682_p2, %p681_p0 }
  0x34   : > { %p685_p9 = por %p684_p7, %p683_p3 }
  0x36   : > { %p686_p10 = pnand %p685_p9, %p679_p13 }
  0x38   : > { %689 = shalt.err (!%p686_p10)
}
  0x39   : > { %s690_s4 = scalar_lea.vmem %s855_s20, 512  ;;  %s748_s5 = smov [#allocation2]  }
  0x3a   : > { %p691_p1 = scmp.ne.s32.totalorder %s855_s20, %s690_s4  ;;  %s695_s6 = sshll.u32 %s748_s5, 4  ;;  %s696_s6 = int_to_ptr.vmem [resolvable:$false] %s695_s6 }
  0x3b   : > { %s697_s7 = scalar_lea.vmem %s696_s6, 1024  ;;  %p698_p8 = scmp.lt.s32.totalorder %s855_s20, %s696_s6 }
  0x3c   : > { %p693_p4 = pnand %p691_p1, %p677_p11  ;;  %p699_p12 = scmp.lt.s32.totalorder %s697_s7, %s690_s4 }
  0x3e   : > { %p694_p5 = pneg %p693_p4  ;;  %p700_p0 = por %p699_p12, %p698_p8 }
  0x40   : > { %p701_p2 = pnand %p700_p0, %p694_p5 }
  0x42   : > { %704 = shalt.err (!%p701_p2)
}
  0x43   : > { %s749_s9 = smov 128   ;;  %s750_s13 = smov 8  }
  0x44   : > { %600 = dma.hbm_to_vmem [thread:$0]  (!%p857_p6), %s853_s26, 512, %s855_s20, %s861_s12, %s749_s9, %s749_s9, %s750_s13  }
  0x45   : > { %p972_p11 = scmp.ne.s32.totalorder %s969_s17, 0 }
  0x46   : > { %s140_s18 = sand.u32 (!%p972_p11), 1, %s735_s10   ;;  %p973_p13 = scmp.ne.s32.totalorder (!%p972_p11), %s968_s16, 0 }
  0x47   : > { %138 = sbr.rel (%p972_p11) target bundleno = 604 (0x25c), region = 28  ;;  %s527_s24 = sshll.u32 (!%p972_p11), %s140_s18, 5 }
  0x48   : > { %s141_s25 = scalar_lea.sflag (!%p972_p11), [#allocation3], %s140_s18  ;;  %s144_s19 = scalar_lea.vmem (!%p972_p11), [#allocation2], %s527_s24 }
  0x4e   : > { %722 = dma.done.wait (%p973_p13), %s141_s25, 512  }
  0x4f   : > { %724 = vsyncadd (%p973_p13), %s141_s25, 4294966784  ;;  %p974_p3 = scmp.ne.s32.totalorder %s966_s14, 0 }
  0x51   : > { %726 = dma.done.wait (%p974_p3), [#allocation5], 128  }
  0x52   : > { %728 = vsyncadd (%p974_p3), [#allocation5], 4294967168  ;;  %v751_v0 = vmov 0.0   ;;  %vm752_vm0 = vmmov 0   ;;  %v176_v1 = vld [vmem:[%s144_s19] sm:$0xff]  ;;  %s753_s16 = smov 1   ;;  %v166_v5 = vlaneseq }
  0x53   : > { %555 = vmatprep.subr.bf16.mxu0 %v751_v0  ;;  %563 = vmatprep.subr.bf16.mxu1 %v751_v0  ;;  %s754_s17 = smov 127   ;;  %v533_v2 = vld [vmem:[%s144_s19 + $0x8] sm:$0xff]  ;;  %v535_v3 = vld [vmem:[%s144_s19 + $0x10] sm:$0xff]  ;;  %v537_v4 = vld [vmem:[%s144_s19 + $0x18] sm:$0xff]  ;;  %vm194_vm3 = vcmask 1043456   ;;  %vm190_vm4 = vcmask 195584  }
  0x54   : > { %559 = vmatprep.mubr.msk.bf16.mxu0 %vm752_vm0, %v751_v0  ;;  %567 = vmatprep.mubr.msk.bf16.mxu1 %vm752_vm0, %v751_v0  ;;  %v167_v6 = vand.u32 127, %v166_v5  ;;  %v646_v22 = vld [vmem:[#allocation4] sm:$0xff]   ;;  %vm453_vm5 = vcmask 7168   ;;  %p975_p6 = scmp.ne.s32.totalorder %s967_s15, 0 }
  0x55   : > { %177 = vrot.lane.b32.xlu0 %v176_v1, %s753_s16  ;;  %180 = vrot.lane.b32.xlu1 %v176_v1, %s754_s17  ;;  %vm460_vm6 = vcmask (!%p975_p6), 15360  }
  0x56   : > { %vm168_vm1 = vcmp.ne.s32.totalorder %v167_v6, 0  ;;  %vm171_vm2 = vcmp.ne.s32.totalorder %v167_v6, 127 }
  0x57   : > { %v529_v7 = vsel %vm168_vm1, 1.0, %v751_v0  ;;  %v530_v8 = vsel %vm171_vm2, 1.0, %v751_v0 }
  0x59   : > { %251 = vrot.lane.b32.xlu0 %v533_v2, %s753_s16  ;;  %254 = vrot.lane.b32.xlu1 %v533_v2, %s754_s17 }
  0x5d   : > { %319 = vrot.lane.b32.xlu0 %v535_v3, %s753_s16  ;;  %387 = vrot.lane.b32.xlu1 %v537_v4, %s753_s16 }
  0x61   : > { %322 = vrot.lane.b32.xlu0 %v535_v3, %s754_s17  ;;  %390 = vrot.lane.b32.xlu1 %v537_v4, %s754_s17 }
  0xc7   : > { %v178_v9 = vpop.permute.xlu0 %177  ;;  %v181_v10 = vpop.permute.xlu1 %180 }
  0xc8   : > { %v179_v11 = vmul.f32 %v529_v7, %v178_v9  ;;  %v182_v12 = vmul.f32 %v530_v8, %v181_v10 }
  0xca   : > { %v184_v13 = vpack.c.bf16 %v182_v12, %v182_v12  ;;  %v183_v14 = vpack.c.bf16 %v176_v1, %v179_v11 }
  0xcb   : > { %v252_v15 = vpop.permute.xlu0 %251  ;;  %v255_v16 = vpop.permute.xlu1 %254 }
  0xcc   : > { %v253_v17 = vmul.f32 %v529_v7, %v252_v15  ;;  %556 = vmatpush3.bf16.msra.mxu0 %v183_v14  ;;  %v256_v18 = vmul.f32 %v530_v8, %v255_v16  ;;  %v196_v19 = vsel %vm194_vm3, %v184_v13, 0 }
  0xcd   : > { %557 = vmatprep.subr.bf16.mxu0 %v751_v0 }
  0xce   : > { %v258_v20 = vpack.c.bf16 %v256_v18, %v256_v18  ;;  %v257_v21 = vpack.c.bf16 %v533_v2, %v253_v17 }
  0xcf   : > { %v320_v23 = vpop.permute.xlu0 %319  ;;  %v388_v24 = vpop.permute.xlu1 %387 }
  0xd0   : > { %558 = vmatpush3.bf16.msra.mxu0 %v196_v19  ;;  %564 = vmatpush3.bf16.msra.mxu1 %v257_v21  ;;  %v321_v25 = vmul.f32 %v529_v7, %v320_v23  ;;  %v389_v26 = vmul.f32 %v529_v7, %v388_v24  ;;  %v260_v27 = vsel %vm194_vm3, %v258_v20, 0 }
  0xd1   : > { %565 = vmatprep.subr.bf16.mxu1 %v751_v0  ;;  %571 = vmatprep.subr.bf16.mxu0 %v751_v0 }
  0xd2   : > { %v325_v28 = vpack.c.bf16 %v535_v3, %v321_v25  ;;  %v393_v31 = vpack.c.bf16 %v537_v4, %v389_v26 }
  0xd3   : > { %560 = vmatmul.mubr.msk.bf16.vlgmr.msra.gmra.mrb[0].mxu0 %vm190_vm4, %v646_v22  ;;  %v323_v29 = vpop.permute.xlu0 %322  ;;  %v391_v30 = vpop.permute.xlu1 %390 }
  0xd4   : > { %566 = vmatpush3.bf16.msra.mxu1 %v260_v27  ;;  %v324_v32 = vmul.f32 %v530_v8, %v323_v29  ;;  %572 = vmatpush3.bf16.msra.mxu0 %v325_v28  ;;  %v392_v33 = vmul.f32 %v530_v8, %v391_v30  ;;  %v755_v28 = vmov (!%p975_p6), 0.0  }
  0xd5   : > { %573 = vmatprep.subr.bf16.mxu0 %v751_v0  ;;  %579 = vmatprep.subr.bf16.mxu1 %v751_v0  ;;  %461 = vst.msk [vmem:[%s961_s2] sm:$0xff] (!%p975_p6), %vm460_vm6, %v755_v28  ;;  %462 = vst.msk [vmem:[%s961_s2 + $0x8] sm:$0xff] (!%p975_p6), %vm460_vm6, %v755_v28 }
  0xd6   : > { %v326_v34 = vpack.c.bf16 %v324_v32, %v324_v32  ;;  %v394_v35 = vpack.c.bf16 %v392_v33, %v392_v33  ;;  %575 = vmatprep.mubr.msk.bf16.mxu0 %vm752_vm0, %v751_v0 }
  0xd7   : > { %568 = vmatmul.mubr.msk.bf16.vlgmr.msra.gmra.mrb[0].mxu1 %vm190_vm4, %v646_v22 }
  0xd8   : > { %v328_v36 = vsel %vm194_vm3, %v326_v34, 0  ;;  %580 = vmatpush3.bf16.msra.mxu1 %v393_v31  ;;  %583 = vmatprep.mubr.msk.bf16.mxu1 %vm752_vm0, %v751_v0  ;;  %v396_v37 = vsel %vm194_vm3, %v394_v35, 0 }
  0xd9   : > { %574 = vmatpush3.bf16.msra.mxu0 %v328_v36  ;;  %581 = vmatprep.subr.bf16.mxu1 %v751_v0 }
  0xdc   : > { %576 = vmatmul.mubr.msk.bf16.vlgmr.msra.gmra.mrb[4].mxu0 %vm190_vm4, %v646_v22  ;;  %582 = vmatpush3.bf16.msra.mxu1 %v396_v37 }
  0xdf   : > { %584 = vmatmul.mubr.msk.bf16.vlgmr.msra.gmra.mrb[4].mxu1 %vm190_vm4, %v646_v22 }
 0x1a6   : > { %v232_v38 = vpop.f32.mrb[0].mxu0 }
 0x1a7   : > { %239 = vadd.xlane.f32.xlu0 %v232_v38  ;;  %v561_v39 = vpop.f32.mrb[1].mxu0  ;;  %v243_v42 = vmul.f32 %v232_v38, %v232_v38 }
 0x1a8   : > { %v235_v40 = vpop.f32.mrb[2].mxu0 }
 0x1a9   : > { %v562_v41 = vpop.f32.mrb[3].mxu0  ;;  %v244_v50 = vmul.f32 %v235_v40, %v235_v40 }
 0x1aa   : > { %v296_v43 = vpop.f32.mrb[0].mxu1 }
 0x1ab   : > { %303 = vadd.xlane.f32.xlu1 %v296_v43  ;;  %v569_v44 = vpop.f32.mrb[1].mxu1  ;;  %245 = vadd.xlane.f32.xlu0 %v243_v42  ;;  %v307_v49 = vmul.f32 %v296_v43, %v296_v43 }
 0x1ac   : > { %v299_v45 = vpop.f32.mrb[2].mxu1 }
 0x1ad   : > { %v570_v46 = vpop.f32.mrb[3].mxu1  ;;  %v308_v56 = vmul.f32 %v299_v45, %v299_v45 }
 0x1af   : > { %305 = vadd.xlane.f32.xlu0 %v299_v45  ;;  %241 = vadd.xlane.f32.xlu1 %v235_v40  ;;  %v364_v47 = vpop.f32.mrb[4].mxu0 }
 0x1b0   : > { %v577_v48 = vpop.f32.mrb[5].mxu0  ;;  %v375_v58 = vmul.f32 %v364_v47, %v364_v47 }
 0x1b1   : > { %v367_v51 = vpop.f32.mrb[6].mxu0 }
 0x1b2   : > { %v578_v52 = vpop.f32.mrb[7].mxu0  ;;  %v432_v53 = vpop.f32.mrb[4].mxu1  ;;  %v376_v60 = vmul.f32 %v367_v51, %v367_v51 }
 0x1b3   : > { %309 = vadd.xlane.f32.xlu1 %v307_v49  ;;  %247 = vadd.xlane.f32.xlu0 %v244_v50  ;;  %v585_v54 = vpop.f32.mrb[5].mxu1  ;;  %v443_v59 = vmul.f32 %v432_v53, %v432_v53 }
 0x1b4   : > { %v435_v55 = vpop.f32.mrb[6].mxu1 }
 0x1b5   : > { %v586_v57 = vpop.f32.mrb[7].mxu1  ;;  %v444_v61 = vmul.f32 %v435_v55, %v435_v55 }
 0x1b7   : > { %311 = vadd.xlane.f32.xlu0 %v308_v56  ;;  %371 = vadd.xlane.f32.xlu1 %v364_v47 }
 0x1bb   : > { %439 = vadd.xlane.f32.xlu1 %v432_v53  ;;  %373 = vadd.xlane.f32.xlu0 %v367_v51 }
 0x1bf   : > { %377 = vadd.xlane.f32.xlu1 %v375_v58  ;;  %441 = vadd.xlane.f32.xlu0 %v435_v55 }
 0x1c3   : > { %445 = vadd.xlane.f32.xlu1 %v443_v59  ;;  %379 = vadd.xlane.f32.xlu0 %v376_v60 }
 0x1c7   : > { %447 = vadd.xlane.f32.xlu0 %v444_v61 }
 0x234   : > { %v240_v62 = vpop.xlane.xlu0 %239 }
 0x238   : > { %v304_v63 = vpop.xlane.xlu1 %303  ;;  %v246_v0 = vpop.xlane.xlu0 %245 }
 0x239   : > { %v313_v11 = vadd.f32 %v304_v63, %v240_v62 }
 0x23c   : > { %v306_v1 = vpop.xlane.xlu0 %305  ;;  %v242_v2 = vpop.xlane.xlu1 %241 }
 0x23d   : > { %v314_v17 = vadd.f32 %v306_v1, %v242_v2 }
 0x240   : > { %v310_v3 = vpop.xlane.xlu1 %309  ;;  %v248_v4 = vpop.xlane.xlu0 %247 }
 0x241   : > { %v315_v12 = vadd.f32 %v310_v3, %v246_v0 }
 0x244   : > { %v312_v5 = vpop.xlane.xlu0 %311  ;;  %v372_v6 = vpop.xlane.xlu1 %371 }
 0x245   : > { %v381_v13 = vadd.f32 %v372_v6, %v313_v11  ;;  %v316_v18 = vadd.f32 %v312_v5, %v248_v4 }
 0x248   : > { %v440_v7 = vpop.xlane.xlu1 %439  ;;  %v374_v8 = vpop.xlane.xlu0 %373 }
 0x249   : > { %v449_v19 = vadd.f32 %v440_v7, %v381_v13  ;;  %v382_v21 = vadd.f32 %v374_v8, %v314_v17 }
 0x24c   : > { %v378_v9 = vpop.xlane.xlu1 %377  ;;  %v442_v10 = vpop.xlane.xlu0 %441 }
 0x24d   : > { %v383_v14 = vadd.f32 %v378_v9, %v315_v12  ;;  %v450_v25 = vadd.f32 %v442_v10, %v382_v21 }
 0x250   : > { %v446_v15 = vpop.xlane.xlu1 %445  ;;  %v380_v16 = vpop.xlane.xlu0 %379 }
 0x251   : > { %v451_v20 = vadd.f32 %v446_v15, %v383_v14  ;;  %v384_v23 = vadd.f32 %v380_v16, %v316_v18  ;;  %459 = sbr.rel (%p975_p6) target bundleno = 600 (0x258), region = 40 }
 0x253   : > { %v454_v22 = vsel %vm453_vm5, %v449_v19, %v451_v20 }
 0x254   : > { %v448_v24 = vpop.xlane.xlu0 %447 }
 0x255   : > { %v452_v26 = vadd.f32 %v448_v24, %v384_v23 }
 0x257   : > { %v455_v27 = vsel %vm453_vm5, %v450_v25, %v452_v26 }
 0x258 PF: > { %v463_v29 = vld [vmem:[%s961_s2] sm:$0xff]  ;;  %vm467_vm7 = vcmask 15360   ;;  %v464_v30 = vld [vmem:[%s961_s2 + $0x8] sm:$0xff] }
 0x259   : > { %v465_v31 = vadd.f32 %v463_v29, %v454_v22  ;;  %v466_v32 = vadd.f32 %v464_v30, %v455_v27 }
 0x25b   : > { %468 = vst.msk [vmem:[%s961_s2] sm:$0xff] %vm467_vm7, %v465_v31  ;;  %469 = vst.msk [vmem:[%s961_s2 + $0x8] sm:$0xff] %vm467_vm7, %v466_v32 }
 0x25c PF: > { %p13_p7 = scmp.ge.s32.totalorder %s820_s21, 4   ;;  %s976_s9 = smov %s735_s10 }
 0x25d   : > { %s977_s10 = smov %s739_s11  ;;  %s978_s11 = smov %s846_s8 }
 0x25e   : > { %s979_s12 = smov %s820_s21  ;;  %15 = sbr.rel (!%p13_p7) target bundleno = 4 (0x4), region = 75 }
 0x265   :  { %481 = vsyncpa [#allocation3], 1 }
 0x266   :  { %483 = vsyncpa [#allocation3 + $0x1], 1 }
 0x267   :  { %484 = vsyncpa [#allocation5], 1 }

</bundles_post_ra>
